<compile_context>
chip_gen: v7x
topology: tpu7x:2x2x1
jax: 0.10.0
libtpu: 0.0.40
codegen_flags: <defaults>
</compile_context>

<pallas_src>
import jax
import jax.numpy as jnp
from jax import lax
from jax.experimental import pallas as pl
from jax.experimental.pallas import tpu as pltpu

EPS = 1e-5  # PyTorch InstanceNorm2d default (affine=False, no running stats)


def _roll_lanes(a, shift):
    """jnp.roll along the last axis with a static shift: out[..., i] = a[..., i - shift]."""
    n = a.shape[-1]
    shift = shift % n
    if shift == 0:
        return a
    return jnp.concatenate([a[..., n - shift:], a[..., :n - shift]], axis=-1)


def _make_kernel(C, H, W):
    HW = H * W

    def kernel(x_ref, w1_ref, w2_ref, pos_ref, out_ref):
        # x_ref  : (1, C, HW)  current image, channel-major, lane dim = H*W
        # w*_ref : (C, 9*C)    packed conv weights (tap-major columns)
        # pos_ref: (2, HW)     row 0 = h index of each lane, row 1 = w index
        # out_ref: (1, C, HW)
        # Boundary masks: broadcast int coords once, compare once, reuse for
        # both convs (hoisted out of im2col).
        h_b = jnp.broadcast_to(pos_ref[0:1, :], (C, HW))
        w_b = jnp.broadcast_to(pos_ref[1:2, :], (C, HW))
        is_h_first = h_b == 0
        is_h_last = h_b == H - 1
        is_w_first = w_b == 0
        is_w_last = w_b == W - 1

        def im2col(act):
            # act: (C, HW).  Returns (9C, HW); row block k (= ky*3 + kx) holds
            # act sampled at (reflect(h+ky-1), reflect(w+kx-1)), i.e. the
            # ReflectionPad2d(1) + 3x3 window gather fused (no pad buffer).
            up_a = _roll_lanes(act, W)    # source row h-1
            dn_a = _roll_lanes(act, -W)   # source row h+1
            rows = (
                jnp.where(is_h_first, dn_a, up_a),  # ky = 0 : reflect(h-1)
                act,                                # ky = 1 : h
                jnp.where(is_h_last, up_a, dn_a),   # ky = 2 : reflect(h+1)
            )
            taps = []
            for r in rows:
                lf = _roll_lanes(r, 1)    # source col w-1
                rt = _roll_lanes(r, -1)   # source col w+1
                taps.append(jnp.where(is_w_first, rt, lf))  # kx = 0
                taps.append(r)                              # kx = 1
                taps.append(jnp.where(is_w_last, lf, rt))   # kx = 2
            return jnp.concatenate(taps, axis=0)            # (9C, HW)

        def conv3x3(act, w_ref_):
            # Single fused MXU matmul per conv: (C, 9C) @ (9C, HW) -> (C, HW).
            # Bias intentionally omitted: it cancels in the InstanceNorm below.
            return jnp.dot(w_ref_[...], im2col(act),
                           preferred_element_type=jnp.float32)

        def instance_norm(y):
            # Per-channel biased mean/var over the HW lanes (centered two-pass
            # form for numerical robustness; data is vreg-resident).
            mu = jnp.mean(y, axis=1, keepdims=True)
            yc = y - mu
            var = jnp.mean(yc * yc, axis=1, keepdims=True)
            return yc * lax.rsqrt(var + EPS)

        x = x_ref[0].astype(jnp.float32)                     # (C, HW)
        y = instance_norm(conv3x3(x, w1_ref))
        y = jnp.maximum(y, 0.0)
        y = instance_norm(conv3x3(y, w2_ref))

        # Re-load the input right before the residual add (short live range).
        out_ref[0] = (x_ref[0].astype(jnp.float32) + y).astype(out_ref.dtype)

    return kernel


def _pack_weight(w):
    # (C_out, C_in, 3, 3) OIHW -> (C_out, 9*C_in); column = (ky*3 + kx)*C_in + ci
    c_out, c_in = w.shape[0], w.shape[1]
    return jnp.transpose(w, (0, 2, 3, 1)).reshape(c_out, 9 * c_in)


@jax.jit
def residual_block(x, w1, b1, w2, b2):
    """x: (N, C, H, W) NCHW; w*: (C, C, 3, 3) OIHW; b*: (C,).  Returns NCHW."""
    # Conv biases are per-channel constants and each conv output feeds directly
    # into InstanceNorm2d(affine=False); the norm's mean subtraction removes a
    # per-channel constant exactly, so the biases have no effect on the output.
    del b1, b2
    N, C, H, W = x.shape
    HW = H * W

    x2 = x.reshape(N, C, HW)
    w1m, w2m = _pack_weight(w1), _pack_weight(w2)
    # Per-lane (h, w) indices, computed once outside the kernel.
    h_idx = lax.broadcasted_iota(jnp.int32, (H, W), 0).reshape(1, HW)
    w_idx = lax.broadcasted_iota(jnp.int32, (H, W), 1).reshape(1, HW)
    pos = jnp.concatenate([h_idx, w_idx], axis=0)            # (2, HW)

    out = pl.pallas_call(
        _make_kernel(C, H, W),
        out_shape=jax.ShapeDtypeStruct((N, C, HW), x.dtype),
        grid_spec=pltpu.PrefetchScalarGridSpec(
            num_scalar_prefetch=0,
            grid=(N,),
            in_specs=[
                pl.BlockSpec((1, C, HW), lambda n: (n, 0, 0)),
                pl.BlockSpec((C, 9 * C), lambda n: (0, 0)),
                pl.BlockSpec((C, 9 * C), lambda n: (0, 0)),
                pl.BlockSpec((2, HW), lambda n: (0, 0)),
            ],
            out_specs=pl.BlockSpec((1, C, HW), lambda n: (n, 0, 0)),
        ),
        compiler_params=pltpu.CompilerParams(
            dimension_semantics=("parallel",)),
    )(x2, w1m, w2m, pos)
    return out.reshape(N, C, H, W)


# ---------------- pure-JAX reference (for correctness check) ----------------
def _ref_conv3x3(x, w, b):
    # x: (N, C, H, W), w: (C_out, C_in, 3, 3), b: (C_out,)
    xp = jnp.pad(x, ((0, 0), (0, 0), (1, 1), (1, 1)), mode="reflect")
    y = lax.conv_general_dilated(
        xp, w, window_strides=(1, 1), padding="VALID",
        dimension_numbers=("NCHW", "OIHW", "NCHW"),
        precision=lax.Precision.HIGHEST)
    return y + b[None, :, None, None]


def _ref_instance_norm(x):
    mu = jnp.mean(x, axis=(2, 3), keepdims=True)
    var = jnp.mean((x - mu) ** 2, axis=(2, 3), keepdims=True)
    return (x - mu) * lax.rsqrt(var + EPS)


def residual_block_ref(x, w1, b1, w2, b2):
    y = _ref_instance_norm(_ref_conv3x3(x, w1, b1))
    y = jnp.maximum(y, 0.0)
    y = _ref_instance_norm(_ref_conv3x3(y, w2, b2))
    return x + y


if __name__ == "__main__":
    N, C, H, W = 2, 4, 16, 16  # ResidualBlock(in_features=4) on 16x16 images

    key = jax.random.PRNGKey(0)
    kx, kw1, kb1, kw2, kb2 = jax.random.split(key, 5)

    # NCHW input + PyTorch-layout Conv2d(C, C, 3) parameters.
    x = jax.random.normal(kx, (N, C, H, W), jnp.float32)
    w1 = jax.random.normal(kw1, (C, C, 3, 3), jnp.float32) * 0.1
    b1 = jax.random.normal(kb1, (C,), jnp.float32) * 0.1
    w2 = jax.random.normal(kw2, (C, C, 3, 3), jnp.float32) * 0.1
    b2 = jax.random.normal(kb2, (C,), jnp.float32) * 0.1

    out = jax.block_until_ready(residual_block(x, w1, b1, w2, b2))
    ref = residual_block_ref(x, w1, b1, w2, b2)

    assert out.shape == (N, C, H, W)
    err = float(jnp.max(jnp.abs(out - ref)))
    assert err < 5e-3, f"mismatch vs pure-JAX reference: {err}"

    print("KERNEL_OK")
</pallas_src>

<mosaic_0001>
module attributes {stable_mosaic.version = 11 : i64} {
  func.func @kernel(%arg0: i32, %arg1: memref<1x4x256xf32, #tpu.memory_space<vmem>>, %arg2: memref<4x36xf32, #tpu.memory_space<vmem>>, %arg3: memref<4x36xf32, #tpu.memory_space<vmem>>, %arg4: memref<2x256xi32, #tpu.memory_space<vmem>>, %arg5: memref<1x4x256xf32, #tpu.memory_space<vmem>>) attributes {dimension_semantics = [#tpu.dimension_semantics<parallel>], iteration_bounds = array<i64: 2>, scalar_prefetch = 0 : i64, scratch_operands = 0 : i64, tpu.core_type = #tpu.core_type<tc>, window_params = [{transform_indices = @transform_0, window_bounds = array<i64: 1, 4, 256>}, {pipeline_mode = #tpu.pipeline_mode<synchronous>, transform_indices = @transform_1, window_bounds = array<i64: 4, 36>}, {pipeline_mode = #tpu.pipeline_mode<synchronous>, transform_indices = @transform_2, window_bounds = array<i64: 4, 36>}, {pipeline_mode = #tpu.pipeline_mode<synchronous>, transform_indices = @transform_3, window_bounds = array<i64: 2, 256>}, {transform_indices = @transform_4, window_bounds = array<i64: 1, 4, 256>}]} {
    %c0 = arith.constant 0 : index
    %c0_0 = arith.constant 0 : index
    %0 = vector.load %arg4[%c0, %c0_0] : memref<2x256xi32, #tpu.memory_space<vmem>>, vector<1x256xi32>
    %1 = vector.shape_cast %0 : vector<1x256xi32> to vector<1x256xi32>
    %2 = vector.broadcast %1 : vector<1x256xi32> to vector<4x256xi32>
    %c1 = arith.constant 1 : index
    %c0_1 = arith.constant 0 : index
    %3 = vector.load %arg4[%c1, %c0_1] : memref<2x256xi32, #tpu.memory_space<vmem>>, vector<1x256xi32>
    %4 = vector.shape_cast %3 : vector<1x256xi32> to vector<1x256xi32>
    %5 = vector.broadcast %4 : vector<1x256xi32> to vector<4x256xi32>
    %c0_i32 = arith.constant 0 : i32
    %6 = vector.broadcast %c0_i32 : i32 to vector<4x256xi32>
    %7 = arith.cmpi eq, %2, %6 : vector<4x256xi32>
    %c15_i32 = arith.constant 15 : i32
    %8 = vector.broadcast %c15_i32 : i32 to vector<4x256xi32>
    %9 = arith.cmpi eq, %2, %8 : vector<4x256xi32>
    %c0_i32_2 = arith.constant 0 : i32
    %10 = vector.broadcast %c0_i32_2 : i32 to vector<4x256xi32>
    %11 = arith.cmpi eq, %5, %10 : vector<4x256xi32>
    %c15_i32_3 = arith.constant 15 : i32
    %12 = vector.broadcast %c15_i32_3 : i32 to vector<4x256xi32>
    %13 = arith.cmpi eq, %5, %12 : vector<4x256xi32>
    %c0_4 = arith.constant 0 : index
    %c0_5 = arith.constant 0 : index
    %c0_6 = arith.constant 0 : index
    %14 = vector.load %arg1[%c0_4, %c0_5, %c0_6] : memref<1x4x256xf32, #tpu.memory_space<vmem>>, vector<1x4x256xf32>
    %15 = vector.shape_cast %14 : vector<1x4x256xf32> to vector<4x256xf32>
    %c0_7 = arith.constant 0 : index
    %c0_8 = arith.constant 0 : index
    %16 = vector.load %arg2[%c0_7, %c0_8] : memref<4x36xf32, #tpu.memory_space<vmem>>, vector<4x36xf32>
    %17 = vector.extract_strided_slice %15 {offsets = [0, 240], sizes = [4, 16], strides = [1, 1]} : vector<4x256xf32> to vector<4x16xf32>
    %18 = vector.extract_strided_slice %15 {offsets = [0, 0], sizes = [4, 240], strides = [1, 1]} : vector<4x256xf32> to vector<4x240xf32>
    %19 = tpu.concatenate %17, %18 in 1 : vector<4x16xf32>, vector<4x240xf32> -> vector<4x256xf32>
    %20 = vector.extract_strided_slice %15 {offsets = [0, 16], sizes = [4, 240], strides = [1, 1]} : vector<4x256xf32> to vector<4x240xf32>
    %21 = vector.extract_strided_slice %15 {offsets = [0, 0], sizes = [4, 16], strides = [1, 1]} : vector<4x256xf32> to vector<4x16xf32>
    %22 = tpu.concatenate %20, %21 in 1 : vector<4x240xf32>, vector<4x16xf32> -> vector<4x256xf32>
    %23 = arith.select %7, %22, %19 : vector<4x256xi1>, vector<4x256xf32>
    %24 = arith.select %9, %19, %22 : vector<4x256xi1>, vector<4x256xf32>
    %25 = vector.extract_strided_slice %23 {offsets = [0, 255], sizes = [4, 1], strides = [1, 1]} : vector<4x256xf32> to vector<4x1xf32>
    %26 = vector.extract_strided_slice %23 {offsets = [0, 0], sizes = [4, 255], strides = [1, 1]} : vector<4x256xf32> to vector<4x255xf32>
    %27 = tpu.concatenate %25, %26 in 1 : vector<4x1xf32>, vector<4x255xf32> -> vector<4x256xf32>
    %28 = vector.extract_strided_slice %23 {offsets = [0, 1], sizes = [4, 255], strides = [1, 1]} : vector<4x256xf32> to vector<4x255xf32>
    %29 = vector.extract_strided_slice %23 {offsets = [0, 0], sizes = [4, 1], strides = [1, 1]} : vector<4x256xf32> to vector<4x1xf32>
    %30 = tpu.concatenate %28, %29 in 1 : vector<4x255xf32>, vector<4x1xf32> -> vector<4x256xf32>
    %31 = arith.select %11, %30, %27 : vector<4x256xi1>, vector<4x256xf32>
    %32 = arith.select %13, %27, %30 : vector<4x256xi1>, vector<4x256xf32>
    %33 = vector.extract_strided_slice %15 {offsets = [0, 255], sizes = [4, 1], strides = [1, 1]} : vector<4x256xf32> to vector<4x1xf32>
    %34 = vector.extract_strided_slice %15 {offsets = [0, 0], sizes = [4, 255], strides = [1, 1]} : vector<4x256xf32> to vector<4x255xf32>
    %35 = tpu.concatenate %33, %34 in 1 : vector<4x1xf32>, vector<4x255xf32> -> vector<4x256xf32>
    %36 = vector.extract_strided_slice %15 {offsets = [0, 1], sizes = [4, 255], strides = [1, 1]} : vector<4x256xf32> to vector<4x255xf32>
    %37 = vector.extract_strided_slice %15 {offsets = [0, 0], sizes = [4, 1], strides = [1, 1]} : vector<4x256xf32> to vector<4x1xf32>
    %38 = tpu.concatenate %36, %37 in 1 : vector<4x255xf32>, vector<4x1xf32> -> vector<4x256xf32>
    %39 = arith.select %11, %38, %35 : vector<4x256xi1>, vector<4x256xf32>
    %40 = arith.select %13, %35, %38 : vector<4x256xi1>, vector<4x256xf32>
    %41 = vector.extract_strided_slice %24 {offsets = [0, 255], sizes = [4, 1], strides = [1, 1]} : vector<4x256xf32> to vector<4x1xf32>
    %42 = vector.extract_strided_slice %24 {offsets = [0, 0], sizes = [4, 255], strides = [1, 1]} : vector<4x256xf32> to vector<4x255xf32>
    %43 = tpu.concatenate %41, %42 in 1 : vector<4x1xf32>, vector<4x255xf32> -> vector<4x256xf32>
    %44 = vector.extract_strided_slice %24 {offsets = [0, 1], sizes = [4, 255], strides = [1, 1]} : vector<4x256xf32> to vector<4x255xf32>
    %45 = vector.extract_strided_slice %24 {offsets = [0, 0], sizes = [4, 1], strides = [1, 1]} : vector<4x256xf32> to vector<4x1xf32>
    %46 = tpu.concatenate %44, %45 in 1 : vector<4x255xf32>, vector<4x1xf32> -> vector<4x256xf32>
    %47 = arith.select %11, %46, %43 : vector<4x256xi1>, vector<4x256xf32>
    %48 = arith.select %13, %43, %46 : vector<4x256xi1>, vector<4x256xf32>
    %49 = tpu.concatenate %31, %23, %32, %39, %15, %40, %47, %24, %48 in 0 : vector<4x256xf32>, vector<4x256xf32>, vector<4x256xf32>, vector<4x256xf32>, vector<4x256xf32>, vector<4x256xf32>, vector<4x256xf32>, vector<4x256xf32>, vector<4x256xf32> -> vector<36x256xf32>
    %cst = arith.constant dense<0.000000e+00> : vector<4x256xf32>
    %50 = tpu.matmul %16, %49, %cst {dimension_numbers = #tpu.dot_dimension_numbers<[1], [0], [0], [1], [0, 0, 1, 1], [], []>} : vector<4x36xf32>, vector<36x256xf32>, vector<4x256xf32> -> vector<4x256xf32>
    %cst_9 = arith.constant dense<0.000000e+00> : vector<4xf32>
    %51 = vector.multi_reduction <add>, %50, %cst_9 [1] : vector<4x256xf32> to vector<4xf32>
    %52 = vector.shape_cast %51 : vector<4xf32> to vector<4x1xf32>
    %cst_10 = arith.constant 2.560000e+02 : f32
    %53 = vector.broadcast %cst_10 : f32 to vector<4x1xf32>
    %54 = arith.divf %52, %53 : vector<4x1xf32>
    %55 = vector.broadcast %54 : vector<4x1xf32> to vector<4x256xf32>
    %56 = arith.subf %50, %55 : vector<4x256xf32>
    %57 = arith.mulf %56, %56 : vector<4x256xf32>
    %cst_11 = arith.constant dense<0.000000e+00> : vector<4xf32>
    %58 = vector.multi_reduction <add>, %57, %cst_11 [1] : vector<4x256xf32> to vector<4xf32>
    %59 = vector.shape_cast %58 : vector<4xf32> to vector<4x1xf32>
    %cst_12 = arith.constant 2.560000e+02 : f32
    %60 = vector.broadcast %cst_12 : f32 to vector<4x1xf32>
    %61 = arith.divf %59, %60 : vector<4x1xf32>
    %cst_13 = arith.constant 9.99999974E-6 : f32
    %62 = vector.broadcast %cst_13 : f32 to vector<4x1xf32>
    %63 = arith.addf %61, %62 : vector<4x1xf32>
    %64 = math.rsqrt %63 : vector<4x1xf32>
    %65 = vector.broadcast %64 : vector<4x1xf32> to vector<4x256xf32>
    %66 = arith.mulf %56, %65 : vector<4x256xf32>
    %cst_14 = arith.constant 0.000000e+00 : f32
    %67 = vector.broadcast %cst_14 : f32 to vector<4x256xf32>
    %68 = arith.maximumf %66, %67 : vector<4x256xf32>
    %c0_15 = arith.constant 0 : index
    %c0_16 = arith.constant 0 : index
    %69 = vector.load %arg3[%c0_15, %c0_16] : memref<4x36xf32, #tpu.memory_space<vmem>>, vector<4x36xf32>
    %70 = vector.extract_strided_slice %68 {offsets = [0, 240], sizes = [4, 16], strides = [1, 1]} : vector<4x256xf32> to vector<4x16xf32>
    %71 = vector.extract_strided_slice %68 {offsets = [0, 0], sizes = [4, 240], strides = [1, 1]} : vector<4x256xf32> to vector<4x240xf32>
    %72 = tpu.concatenate %70, %71 in 1 : vector<4x16xf32>, vector<4x240xf32> -> vector<4x256xf32>
    %73 = vector.extract_strided_slice %68 {offsets = [0, 16], sizes = [4, 240], strides = [1, 1]} : vector<4x256xf32> to vector<4x240xf32>
    %74 = vector.extract_strided_slice %68 {offsets = [0, 0], sizes = [4, 16], strides = [1, 1]} : vector<4x256xf32> to vector<4x16xf32>
    %75 = tpu.concatenate %73, %74 in 1 : vector<4x240xf32>, vector<4x16xf32> -> vector<4x256xf32>
    %76 = arith.select %7, %75, %72 : vector<4x256xi1>, vector<4x256xf32>
    %77 = arith.select %9, %72, %75 : vector<4x256xi1>, vector<4x256xf32>
    %78 = vector.extract_strided_slice %76 {offsets = [0, 255], sizes = [4, 1], strides = [1, 1]} : vector<4x256xf32> to vector<4x1xf32>
    %79 = vector.extract_strided_slice %76 {offsets = [0, 0], sizes = [4, 255], strides = [1, 1]} : vector<4x256xf32> to vector<4x255xf32>
    %80 = tpu.concatenate %78, %79 in 1 : vector<4x1xf32>, vector<4x255xf32> -> vector<4x256xf32>
    %81 = vector.extract_strided_slice %76 {offsets = [0, 1], sizes = [4, 255], strides = [1, 1]} : vector<4x256xf32> to vector<4x255xf32>
    %82 = vector.extract_strided_slice %76 {offsets = [0, 0], sizes = [4, 1], strides = [1, 1]} : vector<4x256xf32> to vector<4x1xf32>
    %83 = tpu.concatenate %81, %82 in 1 : vector<4x255xf32>, vector<4x1xf32> -> vector<4x256xf32>
    %84 = arith.select %11, %83, %80 : vector<4x256xi1>, vector<4x256xf32>
    %85 = arith.select %13, %80, %83 : vector<4x256xi1>, vector<4x256xf32>
    %86 = vector.extract_strided_slice %68 {offsets = [0, 255], sizes = [4, 1], strides = [1, 1]} : vector<4x256xf32> to vector<4x1xf32>
    %87 = vector.extract_strided_slice %68 {offsets = [0, 0], sizes = [4, 255], strides = [1, 1]} : vector<4x256xf32> to vector<4x255xf32>
    %88 = tpu.concatenate %86, %87 in 1 : vector<4x1xf32>, vector<4x255xf32> -> vector<4x256xf32>
    %89 = vector.extract_strided_slice %68 {offsets = [0, 1], sizes = [4, 255], strides = [1, 1]} : vector<4x256xf32> to vector<4x255xf32>
    %90 = vector.extract_strided_slice %68 {offsets = [0, 0], sizes = [4, 1], strides = [1, 1]} : vector<4x256xf32> to vector<4x1xf32>
    %91 = tpu.concatenate %89, %90 in 1 : vector<4x255xf32>, vector<4x1xf32> -> vector<4x256xf32>
    %92 = arith.select %11, %91, %88 : vector<4x256xi1>, vector<4x256xf32>
    %93 = arith.select %13, %88, %91 : vector<4x256xi1>, vector<4x256xf32>
    %94 = vector.extract_strided_slice %77 {offsets = [0, 255], sizes = [4, 1], strides = [1, 1]} : vector<4x256xf32> to vector<4x1xf32>
    %95 = vector.extract_strided_slice %77 {offsets = [0, 0], sizes = [4, 255], strides = [1, 1]} : vector<4x256xf32> to vector<4x255xf32>
    %96 = tpu.concatenate %94, %95 in 1 : vector<4x1xf32>, vector<4x255xf32> -> vector<4x256xf32>
    %97 = vector.extract_strided_slice %77 {offsets = [0, 1], sizes = [4, 255], strides = [1, 1]} : vector<4x256xf32> to vector<4x255xf32>
    %98 = vector.extract_strided_slice %77 {offsets = [0, 0], sizes = [4, 1], strides = [1, 1]} : vector<4x256xf32> to vector<4x1xf32>
    %99 = tpu.concatenate %97, %98 in 1 : vector<4x255xf32>, vector<4x1xf32> -> vector<4x256xf32>
    %100 = arith.select %11, %99, %96 : vector<4x256xi1>, vector<4x256xf32>
    %101 = arith.select %13, %96, %99 : vector<4x256xi1>, vector<4x256xf32>
    %102 = tpu.concatenate %84, %76, %85, %92, %68, %93, %100, %77, %101 in 0 : vector<4x256xf32>, vector<4x256xf32>, vector<4x256xf32>, vector<4x256xf32>, vector<4x256xf32>, vector<4x256xf32>, vector<4x256xf32>, vector<4x256xf32>, vector<4x256xf32> -> vector<36x256xf32>
    %cst_17 = arith.constant dense<0.000000e+00> : vector<4x256xf32>
    %103 = tpu.matmul %69, %102, %cst_17 {dimension_numbers = #tpu.dot_dimension_numbers<[1], [0], [0], [1], [0, 0, 1, 1], [], []>} : vector<4x36xf32>, vector<36x256xf32>, vector<4x256xf32> -> vector<4x256xf32>
    %cst_18 = arith.constant dense<0.000000e+00> : vector<4xf32>
    %104 = vector.multi_reduction <add>, %103, %cst_18 [1] : vector<4x256xf32> to vector<4xf32>
    %105 = vector.shape_cast %104 : vector<4xf32> to vector<4x1xf32>
    %cst_19 = arith.constant 2.560000e+02 : f32
    %106 = vector.broadcast %cst_19 : f32 to vector<4x1xf32>
    %107 = arith.divf %105, %106 : vector<4x1xf32>
    %108 = vector.broadcast %107 : vector<4x1xf32> to vector<4x256xf32>
    %109 = arith.subf %103, %108 : vector<4x256xf32>
    %110 = arith.mulf %109, %109 : vector<4x256xf32>
    %cst_20 = arith.constant dense<0.000000e+00> : vector<4xf32>
    %111 = vector.multi_reduction <add>, %110, %cst_20 [1] : vector<4x256xf32> to vector<4xf32>
    %112 = vector.shape_cast %111 : vector<4xf32> to vector<4x1xf32>
    %cst_21 = arith.constant 2.560000e+02 : f32
    %113 = vector.broadcast %cst_21 : f32 to vector<4x1xf32>
    %114 = arith.divf %112, %113 : vector<4x1xf32>
    %cst_22 = arith.constant 9.99999974E-6 : f32
    %115 = vector.broadcast %cst_22 : f32 to vector<4x1xf32>
    %116 = arith.addf %114, %115 : vector<4x1xf32>
    %117 = math.rsqrt %116 : vector<4x1xf32>
    %118 = vector.broadcast %117 : vector<4x1xf32> to vector<4x256xf32>
    %119 = arith.mulf %109, %118 : vector<4x256xf32>
    %c0_23 = arith.constant 0 : index
    %c0_24 = arith.constant 0 : index
    %c0_25 = arith.constant 0 : index
    %120 = vector.load %arg1[%c0_23, %c0_24, %c0_25] : memref<1x4x256xf32, #tpu.memory_space<vmem>>, vector<1x4x256xf32>
    %121 = vector.shape_cast %120 : vector<1x4x256xf32> to vector<4x256xf32>
    %122 = arith.addf %121, %119 : vector<4x256xf32>
    %c0_26 = arith.constant 0 : index
    %c0_27 = arith.constant 0 : index
    %c0_28 = arith.constant 0 : index
    %123 = vector.load %arg5[%c0_26, %c0_27, %c0_28] : memref<1x4x256xf32, #tpu.memory_space<vmem>>, vector<1x4x256xf32>
    %124 = vector.shape_cast %123 : vector<1x4x256xf32> to vector<4x256xf32>
    %125 = vector.shape_cast %122 : vector<4x256xf32> to vector<1x4x256xf32>
    tpu.vector_store %arg5[%c0_26, %c0_27, %c0_28], %125 {strides = array<i32>} : memref<1x4x256xf32, #tpu.memory_space<vmem>>, vector<1x4x256xf32>,
    return
  }
  func.func @transform_0(%arg0: i32) -> (i32, i32, i32) {
    %c0_i32 = arith.constant 0 : i32
    %c0_i32_0 = arith.constant 0 : i32
    %c0_i32_1 = arith.constant 0 : i32
    return %arg0, %c0_i32, %c0_i32_0 : i32, i32, i32
  }
  func.func @transform_1(%arg0: i32) -> (i32, i32) {
    %c0_i32 = arith.constant 0 : i32
    %c0_i32_0 = arith.constant 0 : i32
    %c0_i32_1 = arith.constant 0 : i32
    return %c0_i32, %c0_i32_0 : i32, i32
  }
  func.func @transform_2(%arg0: i32) -> (i32, i32) {
    %c0_i32 = arith.constant 0 : i32
    %c0_i32_0 = arith.constant 0 : i32
    %c0_i32_1 = arith.constant 0 : i32
    return %c0_i32, %c0_i32_0 : i32, i32
  }
  func.func @transform_3(%arg0: i32) -> (i32, i32) {
    %c0_i32 = arith.constant 0 : i32
    %c0_i32_0 = arith.constant 0 : i32
    %c0_i32_1 = arith.constant 0 : i32
    return %c0_i32, %c0_i32_0 : i32, i32
  }
  func.func @transform_4(%arg0: i32) -> (i32, i32, i32) {
    %c0_i32 = arith.constant 0 : i32
    %c0_i32_0 = arith.constant 0 : i32
    %c0_i32_1 = arith.constant 0 : i32
    return %arg0, %c0_i32, %c0_i32_0 : i32, i32, i32
  }
}

</mosaic_0001>

<bundles_post_ra>
// kernel: residual_block.1
= control target key start
LH: loop header
LB: loop body
LE: loop exit
PB: predicated region body
PF: predicated region fallthrough
CT: control target
= control target key end

     0   :  { %s875_s15 = smov 0   ;;  %s1128_s0 = inlined_call_operand.vmem [shape: f32[2,4,256], index: 0, kind: input, shape index: {}]   ;;  %s1129_s1 = inlined_call_operand.vmem [shape: f32[4,36], index: 1, kind: input, shape index: {}]   ;;  %s1130_s2 = inlined_call_operand.vmem [shape: f32[4,36], index: 2, kind: input, shape index: {}]   ;;  %s1131_s3 = inlined_call_operand.vmem [shape: s32[2,256], index: 3, kind: input, shape index: {}]   ;;  %s1132_s4 = inlined_call_operand.vmem [shape: f32[2,4,256], index: 4, kind: output, shape index: {}]  }
   0x1 LB: > { %s743_s16 = sadd.s32 4294967295, %s843_s15   ;;  %p747_p0 = scmp.ge.s32.totalorder %s843_s15, 1  ;;  %s843_s15 = sphi %s875_s15, %s14_s15  }
   0x2   : > { %p162_p1 = scmp.lt.s32.totalorder %s843_s15, 3 }
   0x4   : > { %p163_p2 = pnand %p747_p0, %p162_p1 }
   0x5   : > { %p188_p3 = scmp.lt.s32.totalorder (!%p163_p2), %s743_s16, 1  ;;  %s845_s21 = smov (!%p163_p2), 112   ;;  %v199_v4 = vlaneseq (!%p163_p2)  ;;  %v198_v8 = vld [vmem:[%s1131_s3] ss:$2 sm:$0x3] (!%p163_p2)  ;;  %vm243_vm0 = vcmask (!%p163_p2), 916480  }
   0x6   : > { %166 = sbr.rel (%p163_p2) target bundleno = 1592 (0x638), region = 36  ;;  %s846_s22 = smov (!%p163_p2), 16   ;;  %vm234_vm1 = vcmask (!%p163_p2), 130048   ;;  %v849_v25 = vmov (!%p163_p2), 0.0   ;;  %vm269_vm6 = vcmask (!%p163_p2), 1039360   ;;  %vm260_vm7 = vcmask (!%p163_p2), 7168  }
   0x7   : > { %s847_s23 = smov (!%p163_p2), 127   ;;  %s848_s24 = smov (!%p163_p2), 1   ;;  %v200_v5 = vshrl.u32 (!%p163_p2), %v199_v4, 7  ;;  %429 = vmatprep.mubr.f32.mxu0 (!%p163_p2), %v849_v25  ;;  %655 = vmatprep.mubr.f32.mxu1 (!%p163_p2), %v849_v25  ;;  %v752_v26 = vld [vmem:[%s1131_s3 + $0x1] ss:$2 sm:$0x3] (!%p163_p2) }
   0x8   : > { %vm346_vm12 = vcmask (!%p163_p2), 1043456   ;;  %vm355_vm13 = vcmask (!%p163_p2), 293888  }
   0x9   : > { %v201_v6 = vsub.s32 (!%p163_p2), 0, %v200_v5  ;;  %v205_v7 = vsub.s32 (!%p163_p2), 1, %v200_v5 }
   0xb   : > { %v914_v10 = vrot.slane (!%p163_p2), %v198_v8, %v201_v6  ;;  %v916_v11 = vrot.slane (!%p163_p2), %v198_v8, %v205_v7  ;;  %v955_v29 = vrot.slane (!%p163_p2), %v752_v26, %v201_v6  ;;  %v957_v30 = vrot.slane (!%p163_p2), %v752_v26, %v205_v7 }
   0xd   : > { %s1134_s16 = smov (!%p188_p3, %s743_s16), 1  ;;  %vm217_vm2 = vcmp.eq.s32.totalorder %v914_v10, 0  ;;  %vm218_vm3 = vcmp.eq.s32.totalorder %v916_v11, 0  ;;  %vm219_vm4 = vcmp.eq.s32.totalorder %v914_v10, 15  ;;  %vm220_vm5 = vcmp.eq.s32.totalorder %v916_v11, 15 }
   0xe   : > { %s761_s17 = sshll.u32 %s1134_s16, 3  ;;  %vm221_vm8 = vcmp.eq.s32.totalorder %v955_v29, 0  ;;  %vm222_vm9 = vcmp.eq.s32.totalorder %v957_v30, 0  ;;  %vm223_vm10 = vcmp.eq.s32.totalorder %v955_v29, 15  ;;  %vm224_vm11 = vcmp.eq.s32.totalorder %v957_v30, 15 }
   0xf   : > { %s192_s20 = scalar_lea.vmem %s1128_s0, %s761_s17  ;;  %s197_s9 = scalar_lea.vmem %s1132_s4, %s761_s17 }
  0x10   : > { %v891_v0 = vld [vmem:[%s192_s20] sm:$0xff] }
  0x11   : > { %239 = vrot.lane.b32.xlu1 %v891_v0, %s845_s21  ;;  %v897_v1 = vcombine.high %v891_v0, %v891_v0 }
  0x13   : > { %229 = vrot.lane.b32.xlu0 %v897_v1, %s846_s22  ;;  %v797_v2 = vpack.i.bf16 %v897_v1, %v891_v0  ;;  %v792_v3 = vpack.i.bf16 %v891_v0, %v897_v1 }
  0x15   : > { %241 = vrot.lane.b32.xlu1 %v897_v1, %s845_s21 }
  0x17   : > { %232 = vrot.lane.b32.xlu0 %v891_v0, %s846_s22 }
  0x19   : > { %798 = vrot.lane.b32.xlu1 %v797_v2, %s847_s23 }
  0x1b   : > { %793 = vrot.lane.b32.xlu0 %v792_v3, %s848_s24 }
  0x83   : > { %v240_v9 = vpop.permute.xlu1 %239 }
  0x85   : > { %v230_v12 = vpop.permute.xlu0 %229 }
  0x87   : > { %v242_v13 = vpop.permute.xlu1 %241 }
  0x88   : > { %v244_v15 = vsel %vm243_vm0, %v240_v9, %v242_v13  ;;  %v248_v16 = vsel %vm243_vm0, %v242_v13, %v240_v9 }
  0x89   : > { %v233_v14 = vpop.permute.xlu0 %232 }
  0x8a   : > { %v235_v17 = vsel %vm234_vm1, %v233_v14, %v230_v12  ;;  %v238_v18 = vsel %vm234_vm1, %v230_v12, %v233_v14 }
  0x8b   : > { %v926_v19 = vsel %vm217_vm2, %v244_v15, %v238_v18  ;;  %v250_v20 = vsel %vm218_vm3, %v248_v16, %v235_v17  ;;  %v938_v23 = vsel %vm219_vm4, %v238_v18, %v244_v15  ;;  %v942_v24 = vsel %vm220_vm5, %v235_v17, %v248_v16  ;;  %v799_v27 = vpop.permute.xlu1 %798 }
  0x8c   : > { %v807_v21 = vpack.i.bf16 %v250_v20, %v926_v19  ;;  %v802_v22 = vpack.i.bf16 %v926_v19, %v250_v20  ;;  %v801_v31 = vunpack.i.h.bf16 %v799_v27  ;;  %v800_v32 = vunpack.i.l.bf16 %v799_v27 }
  0x8d   : > { %v794_v28 = vpop.permute.xlu0 %793  ;;  %v325_v41 = vrot.slane %v926_v19, 4  ;;  %v326_v44 = vrot.slane %v250_v20, 4  ;;  %v342_v9 = vrot.slane %v938_v23, 4  ;;  %v343_v12 = vrot.slane %v942_v24, 4 }
  0x8e   : > { %808 = vrot.lane.b32.xlu1 %v807_v21, %s847_s23  ;;  %803 = vrot.lane.b32.xlu0 %v802_v22, %s848_s24  ;;  %v796_v33 = vunpack.i.h.bf16 %v794_v28  ;;  %v795_v34 = vunpack.i.l.bf16 %v794_v28  ;;  %v292_v35 = vsel %vm269_vm6, %v800_v32, %v801_v31  ;;  %v296_v36 = vsel %vm269_vm6, %v801_v31, %v800_v32 }
  0x90   : > { %v284_v37 = vsel %vm260_vm7, %v796_v33, %v795_v34  ;;  %v287_v38 = vsel %vm260_vm7, %v795_v34, %v796_v33 }
  0x91   : > { %v298_v39 = vsel %vm222_vm9, %v296_v36, %v284_v37  ;;  %v297_v40 = vsel %vm221_vm8, %v292_v35, %v287_v38  ;;  %v299_v49 = vsel %vm223_vm10, %v287_v38, %v292_v35  ;;  %v300_v50 = vsel %vm224_vm11, %v284_v37, %v296_v36 }
  0x92   : > { %306 = vrot.lane.b32.xlu1 %v938_v23, %s848_s24  ;;  %302 = vrot.lane.b32.xlu0 %v942_v24, %s848_s24  ;;  %v332_v51 = vrot.slane %v298_v39, 4  ;;  %v331_v52 = vrot.slane %v297_v40, 4  ;;  %v338_v6 = vrot.slane %v299_v49, 4  ;;  %v339_v7 = vrot.slane %v300_v50, 4 }
  0x94   : > { %v352_v21 = vsel %vm346_vm12, %v897_v1, %v339_v7  ;;  %v226_v1 = vld [vmem:[%s1129_s1] sm:$0xf] }
  0x96   : > { %314 = vrot.lane.b32.xlu1 %v942_v24, %s847_s23  ;;  %312 = vrot.lane.b32.xlu0 %v938_v23, %s847_s23  ;;  %v351_v23 = vsel %vm346_vm12, %v891_v0, %v338_v6 }
 0x100   : > { %v809_v42 = vpop.permute.xlu1 %808  ;;  %v804_v43 = vpop.permute.xlu0 %803 }
 0x101   : > { %v811_v45 = vunpack.i.h.bf16 %v809_v42  ;;  %v810_v46 = vunpack.i.l.bf16 %v809_v42  ;;  %v806_v47 = vunpack.i.h.bf16 %v804_v43  ;;  %v805_v48 = vunpack.i.l.bf16 %v804_v43 }
 0x103   : > { %v270_v53 = vsel %vm269_vm6, %v810_v46, %v811_v45  ;;  %v264_v54 = vsel %vm260_vm7, %v805_v48, %v806_v47  ;;  %v261_v55 = vsel %vm260_vm7, %v806_v47, %v805_v48  ;;  %v274_v56 = vsel %vm269_vm6, %v811_v45, %v810_v46 }
 0x104   : > { %v307_v57 = vpop.permute.xlu1 %306  ;;  %v303_v58 = vpop.permute.xlu0 %302  ;;  %v276_v59 = vsel %vm222_vm9, %v274_v56, %v261_v55  ;;  %v278_v60 = vsel %vm224_vm11, %v261_v55, %v274_v56  ;;  %v275_v61 = vsel %vm221_vm8, %v270_v53, %v264_v54  ;;  %v277_v62 = vsel %vm223_vm10, %v264_v54, %v270_v53 }
 0x105   : > { %v348_v63 = vsel %vm346_vm12, %v276_v59, %v326_v44  ;;  %v350_v2 = vsel %vm346_vm12, %v278_v60, %v332_v51  ;;  %v347_v4 = vsel %vm346_vm12, %v275_v61, %v325_v41  ;;  %v349_v5 = vsel %vm346_vm12, %v277_v62, %v331_v52 }
 0x106   : > { %v763_v3 = vpack.c.bf16 %v350_v2, %v348_v63  ;;  %v765_v8 = vpack.c.bf16 %v349_v5, %v347_v4  ;;  %v308_v15 = vsel %vm260_vm7, %v307_v57, %v303_v58  ;;  %v311_v16 = vsel %vm260_vm7, %v303_v58, %v307_v57 }
 0x108   : > { %v315_v13 = vpop.permute.xlu1 %314  ;;  %v313_v14 = vpop.permute.xlu0 %312  ;;  %764 = vmatprep.subr.bf16.mxu0 %v763_v3 }
 0x109   : > { %v316_v17 = vsel %vm269_vm6, %v313_v14, %v315_v13  ;;  %v320_v18 = vsel %vm269_vm6, %v315_v13, %v313_v14  ;;  %766 = vmatpush1.bf16.msra.mxu0 %v765_v8 }
 0x10a   : > { %v321_v19 = vsel %vm221_vm8, %v316_v17, %v311_v16  ;;  %v322_v20 = vsel %vm222_vm9, %v320_v18, %v308_v15  ;;  %v324_v27 = vsel %vm224_vm11, %v308_v15, %v320_v18  ;;  %v323_v28 = vsel %vm223_vm10, %v311_v16, %v316_v17 }
 0x10b   : > { %v354_v22 = vsel %vm346_vm12, %v322_v20, %v343_v12  ;;  %v353_v24 = vsel %vm346_vm12, %v321_v19, %v342_v9 }
 0x10c   : > { %v767_v25 = vpack.c.bf16 %v354_v22, %v352_v21  ;;  %v769_v26 = vpack.c.bf16 %v353_v24, %v351_v23 }
 0x10e   : > { %768 = vmatprep.subr.bf16.mxu0 %v767_v25 }
 0x10f   : > { %770 = vmatpush1.bf16.msra.mxu0 %v769_v26 }
 0x110   : > { %753 = vmatprep.subr.msk.mxu0 %vm346_vm12, %v324_v27 }
 0x113   : > { %754 = vmatpush1.msk.msra.mxu0 %vm346_vm12, %v323_v28 }
 0x114   : > { %755 = vmatmul.mubr.msk.f32.vlgmr.msra.gmra.mrb[0].mxu0 %vm355_vm13, %v226_v1 }
 0x1e7   : > { %v431_v31 = vpop.f32.mrb[0].mxu0 }
 0x1e8   : > { %v436_v32 = vsel %vm346_vm12, %v431_v31, 0.0  ;;  %v433_v33 = vpop.f32.mrb[1].mxu0 }
 0x1e9   : > { %v437_v34 = vsel %vm346_vm12, %v433_v33, 0.0 }
 0x1ea   : > { %v438_v35 = vadd.f32 %v437_v34, %v436_v32 }
 0x1ec   : > { %439 = vadd.xlane.f32.xlu0 %v438_v35 }
 0x279   : > { %v440_v36 = vpop.xlane.xlu0 %439 }
 0x27a   : > { %v442_v37 = vmul.f32 0.00390625, %v440_v36 }
 0x27c   : > { %v443_v38 = vsub.f32 %v431_v31, %v442_v37  ;;  %v444_v39 = vsub.f32 %v433_v33, %v442_v37 }
 0x27e   : > { %v445_v40 = vmul.f32 %v443_v38, %v443_v38  ;;  %v446_v41 = vmul.f32 %v444_v39, %v444_v39 }
 0x280   : > { %v447_v42 = vsel %vm346_vm12, %v445_v40, 0.0  ;;  %v448_v43 = vsel %vm346_vm12, %v446_v41, 0.0 }
 0x281   : > { %v449_v44 = vadd.f32 %v448_v43, %v447_v42 }
 0x283   : > { %450 = vadd.xlane.f32.xlu1 %v449_v44 }
 0x310   : > { %v451_v45 = vpop.xlane.xlu1 %450 }
 0x311   : > { %v452_v46 = vmul.f32 0.00390625, %v451_v45 }
 0x313   : > { %v453_v47 = vadd.f32 1e-05, %v452_v46 }
 0x315   : > { %833 = vrsqrt.f32 %v453_v47 }
 0x31f   : > { %v834_v48 = vpop.eup %833 }
 0x320   : > { %v456_v49 = vmul.f32 %v834_v48, %v444_v39  ;;  %v455_v50 = vmul.f32 %v834_v48, %v443_v38 }
 0x322   : > { %v1022_v51 = vmax.f32 %v456_v49, 0.0  ;;  %v1024_v52 = vmax.f32 %v455_v50, 0.0 }
 0x324   : > { %461 = vrot.lane.b32.xlu0 %v1022_v51, %s846_s22  ;;  %465 = vrot.lane.b32.xlu1 %v1024_v52, %s846_s22  ;;  %v812_v53 = vpack.i.bf16 %v1024_v52, %v1022_v51  ;;  %v817_v54 = vpack.i.bf16 %v1022_v51, %v1024_v52 }
 0x328   : > { %471 = vrot.lane.b32.xlu0 %v1024_v52, %s845_s21  ;;  %473 = vrot.lane.b32.xlu1 %v1022_v51, %s845_s21 }
 0x32c   : > { %813 = vrot.lane.b32.xlu0 %v812_v53, %s848_s24  ;;  %818 = vrot.lane.b32.xlu1 %v817_v54, %s847_s23 }
 0x396   : > { %v462_v55 = vpop.permute.xlu0 %461  ;;  %v466_v56 = vpop.permute.xlu1 %465 }
 0x397   : > { %v467_v59 = vsel %vm234_vm1, %v466_v56, %v462_v55  ;;  %v470_v60 = vsel %vm234_vm1, %v462_v55, %v466_v56 }
 0x39a   : > { %v472_v57 = vpop.permute.xlu0 %471  ;;  %v474_v58 = vpop.permute.xlu1 %473 }
 0x39b   : > { %v475_v61 = vsel %vm243_vm0, %v472_v57, %v474_v58  ;;  %v479_v62 = vsel %vm243_vm0, %v474_v58, %v472_v57 }
 0x39c   : > { %v480_v63 = vsel %vm217_vm2, %v475_v61, %v470_v60  ;;  %v481_v2 = vsel %vm218_vm3, %v479_v62, %v467_v59  ;;  %v1052_v5 = vsel %vm219_vm4, %v470_v60, %v475_v61  ;;  %v483_v6 = vsel %vm220_vm5, %v467_v59, %v479_v62 }
 0x39d   : > { %v827_v3 = vpack.i.bf16 %v481_v2, %v480_v63  ;;  %v822_v4 = vpack.i.bf16 %v480_v63, %v481_v2  ;;  %v554_v19 = vrot.slane %v480_v63, 4  ;;  %v555_v22 = vrot.slane %v481_v2, 4 }
 0x39e   : > { %v814_v7 = vpop.permute.xlu0 %813  ;;  %v819_v8 = vpop.permute.xlu1 %818  ;;  %v570_v50 = vrot.slane %v1052_v5, 4  ;;  %v571_v53 = vrot.slane %v483_v6, 4 }
 0x39f   : > { %828 = vrot.lane.b32.xlu1 %v827_v3, %s847_s23  ;;  %823 = vrot.lane.b32.xlu0 %v822_v4, %s848_s24  ;;  %v816_v9 = vunpack.i.h.bf16 %v814_v7  ;;  %v815_v12 = vunpack.i.l.bf16 %v814_v7  ;;  %v821_v10 = vunpack.i.h.bf16 %v819_v8  ;;  %v820_v13 = vunpack.i.l.bf16 %v819_v8 }
 0x3a1   : > { %v513_v14 = vsel %vm260_vm7, %v816_v9, %v815_v12  ;;  %v516_v11 = vsel %vm260_vm7, %v815_v12, %v816_v9  ;;  %v521_v15 = vsel %vm269_vm6, %v820_v13, %v821_v10  ;;  %v525_v16 = vsel %vm269_vm6, %v821_v10, %v820_v13 }
 0x3a2   : > { %v527_v17 = vsel %vm222_vm9, %v525_v16, %v513_v14  ;;  %v526_v18 = vsel %vm221_vm8, %v521_v15, %v516_v11  ;;  %v528_v27 = vsel %vm223_vm10, %v516_v11, %v521_v15  ;;  %v529_v1 = vsel %vm224_vm11, %v513_v14, %v525_v16 }
 0x3a3   : > { %535 = vrot.lane.b32.xlu1 %v1052_v5, %s848_s24  ;;  %531 = vrot.lane.b32.xlu0 %v483_v6, %s848_s24  ;;  %v561_v28 = vrot.slane %v527_v17, 4  ;;  %v560_v31 = vrot.slane %v526_v18, 4  ;;  %v566_v47 = vrot.slane %v528_v27, 4  ;;  %v567_v48 = vrot.slane %v529_v1, 4 }
 0x3a5   : > { %v579_v62 = vsel %vm346_vm12, %v1022_v51, %v567_v48  ;;  %v578_v2 = vsel %vm346_vm12, %v1024_v52, %v566_v47  ;;  %v459_v51 = vld [vmem:[%s1130_s2] sm:$0xf] }
 0x3a7   : > { %543 = vrot.lane.b32.xlu1 %v483_v6, %s847_s23  ;;  %541 = vrot.lane.b32.xlu0 %v1052_v5, %s847_s23 }
 0x411   : > { %v824_v20 = vpop.permute.xlu0 %823  ;;  %v829_v21 = vpop.permute.xlu1 %828 }
 0x412   : > { %v826_v23 = vunpack.i.h.bf16 %v824_v20  ;;  %v825_v24 = vunpack.i.l.bf16 %v824_v20  ;;  %v831_v25 = vunpack.i.h.bf16 %v829_v21  ;;  %v830_v26 = vunpack.i.l.bf16 %v829_v21 }
 0x414   : > { %v494_v32 = vsel %vm260_vm7, %v825_v24, %v826_v23  ;;  %v499_v33 = vsel %vm269_vm6, %v830_v26, %v831_v25  ;;  %v491_v34 = vsel %vm260_vm7, %v826_v23, %v825_v24  ;;  %v503_v35 = vsel %vm269_vm6, %v831_v25, %v830_v26 }
 0x415   : > { %v532_v36 = vpop.permute.xlu0 %531  ;;  %v536_v37 = vpop.permute.xlu1 %535  ;;  %v505_v38 = vsel %vm222_vm9, %v503_v35, %v491_v34  ;;  %v507_v39 = vsel %vm224_vm11, %v491_v34, %v503_v35  ;;  %v504_v40 = vsel %vm221_vm8, %v499_v33, %v494_v32  ;;  %v506_v41 = vsel %vm223_vm10, %v494_v32, %v499_v33 }
 0x416   : > { %v575_v42 = vsel %vm346_vm12, %v505_v38, %v555_v22  ;;  %v577_v43 = vsel %vm346_vm12, %v507_v39, %v561_v28  ;;  %v574_v45 = vsel %vm346_vm12, %v504_v40, %v554_v19  ;;  %v576_v46 = vsel %vm346_vm12, %v506_v41, %v560_v31 }
 0x417   : > { %v771_v44 = vpack.c.bf16 %v577_v43, %v575_v42  ;;  %v773_v49 = vpack.c.bf16 %v576_v46, %v574_v45  ;;  %v537_v56 = vsel %vm260_vm7, %v536_v37, %v532_v36  ;;  %v540_v57 = vsel %vm260_vm7, %v532_v36, %v536_v37 }
 0x419   : > { %v542_v54 = vpop.permute.xlu0 %541  ;;  %v544_v55 = vpop.permute.xlu1 %543  ;;  %772 = vmatprep.subr.bf16.mxu1 %v771_v44 }
 0x41a   : > { %v545_v58 = vsel %vm269_vm6, %v542_v54, %v544_v55  ;;  %v549_v59 = vsel %vm269_vm6, %v544_v55, %v542_v54  ;;  %774 = vmatpush1.bf16.msra.mxu1 %v773_v49 }
 0x41b   : > { %v550_v60 = vsel %vm221_vm8, %v545_v58, %v540_v57  ;;  %v551_v61 = vsel %vm222_vm9, %v549_v59, %v537_v56  ;;  %v553_v6 = vsel %vm224_vm11, %v537_v56, %v549_v59  ;;  %v552_v7 = vsel %vm223_vm10, %v540_v57, %v545_v58 }
 0x41c   : > { %v581_v63 = vsel %vm346_vm12, %v551_v61, %v571_v53  ;;  %v580_v3 = vsel %vm346_vm12, %v550_v60, %v570_v50 }
 0x41d   : > { %v775_v4 = vpack.c.bf16 %v581_v63, %v579_v62  ;;  %v777_v5 = vpack.c.bf16 %v580_v3, %v578_v2 }
 0x41f   : > { %776 = vmatprep.subr.bf16.mxu1 %v775_v4 }
 0x420   : > { %778 = vmatpush1.bf16.msra.mxu1 %v777_v5 }
 0x421   : > { %756 = vmatprep.subr.msk.mxu1 %vm346_vm12, %v553_v6 }
 0x424   : > { %757 = vmatpush1.msk.msra.mxu1 %vm346_vm12, %v552_v7 }
 0x425   : > { %758 = vmatmul.mubr.msk.f32.vlgmr.msra.gmra.mrb[0].mxu1 %vm355_vm13, %v459_v51 }
 0x4f8   : > { %v657_v52 = vpop.f32.mrb[0].mxu1 }
 0x4f9   : > { %v662_v8 = vsel %vm346_vm12, %v657_v52, 0.0  ;;  %v659_v9 = vpop.f32.mrb[1].mxu1 }
 0x4fa   : > { %v663_v30 = vsel %vm346_vm12, %v659_v9, 0.0 }
 0x4fb   : > { %v664_v12 = vadd.f32 %v663_v30, %v662_v8 }
 0x4fd   : > { %665 = vadd.xlane.f32.xlu0 %v664_v12 }
 0x58a   : > { %v666_v10 = vpop.xlane.xlu0 %665 }
 0x58b   : > { %v667_v13 = vmul.f32 0.00390625, %v666_v10 }
 0x58d   : > { %v668_v14 = vsub.f32 %v657_v52, %v667_v13  ;;  %v669_v11 = vsub.f32 %v659_v9, %v667_v13 }
 0x58f   : > { %v670_v15 = vmul.f32 %v668_v14, %v668_v14  ;;  %v671_v29 = vmul.f32 %v669_v11, %v669_v11 }
 0x591   : > { %v672_v16 = vsel %vm346_vm12, %v670_v15, 0.0  ;;  %v673_v17 = vsel %vm346_vm12, %v671_v29, 0.0 }
 0x592   : > { %v674_v18 = vadd.f32 %v673_v17, %v672_v16 }
 0x594   : > { %675 = vadd.xlane.f32.xlu1 %v674_v18 }
 0x621   : > { %v676_v19 = vpop.xlane.xlu1 %675 }
 0x622   : > { %v677_v20 = vmul.f32 0.00390625, %v676_v19 }
 0x624   : > { %v678_v21 = vadd.f32 1e-05, %v677_v20 }
 0x626   : > { %835 = vrsqrt.f32 %v678_v21 }
 0x630   : > { %v836_v22 = vpop.eup %835 }
 0x631   : > { %v680_v23 = vmul.f32 %v836_v22, %v668_v14  ;;  %v681_v24 = vmul.f32 %v836_v22, %v669_v11 }
 0x633   : > { %v684_v25 = vcombine.low %v680_v23, %v681_v24 }
 0x635   : > { %v686_v26 = vadd.f32 %v684_v25, %v891_v0 }
 0x637   : > { %687 = vst [vmem:[%s197_s9] sm:$0xff] %v686_v26 }
 0x638 PF: > { %s14_s15 = sadd.s32 1, %s843_s15  }
 0x639   : > { %p11_p4 = scmp.ge.s32.totalorder %s14_s15, 4  }
 0x63b   :  { %13 = sbr.rel (!%p11_p4) target bundleno = 1 (0x1), region = 67 }

</bundles_post_ra>
